<compile_context>
chip_gen: v6e
topology: v6e:2x2x1
jax: 0.10.0
libtpu: 0.0.40
codegen_flags: <defaults>
</compile_context>

<pallas_src>
import functools

import jax
import jax.numpy as jnp
from jax.experimental import pallas as pl
from jax.experimental.pallas import tpu as pltpu


# ----------------------------- configuration -------------------------------
WEIGHT_SHAPE = (4, 16, 16)          # adapted weight tensor
FLAT_DIM = 4 * 16 * 16              # 1024 (lane-dense output width)
HIDDEN_DIM = 64
CONDITION_DIM = 32
UPDATE_RATE = 0.01
MAX_M_TILE = 256                    # fills a v6e/v7x 256-wide MXU (2x a v5e MXU)


# ------------------------------- kernel ------------------------------------
def _awc_kernel(cond_ref, flatw_ref,
                w1_ref, b1_ref, w23_ref, b23_ref, w4_ref, b4_ref,
                out_ref):
    """One grid step = m_tile independent (condition, flat_weight) pairs.

    w1..b4 have constant index_maps -> DMA'd once, resident across the grid.
    First tiny matmul is f32; the two large matmuls run the bf16 MXU path
    with f32 accumulation; residual add onto the flattened weight is f32.
    """
    bf16 = jnp.bfloat16

    # condition_encoder Linear(32,64) + ReLU  -- kept fully f32 (tiny matmul).
    h = jnp.dot(cond_ref[...], w1_ref[...],
                preferred_element_type=jnp.float32) + b1_ref[...]
    h = jnp.maximum(h, 0.0)

    # Folded encoder.Linear(64,64) @ generator.Linear(64,128):
    #   relu(x@w1+b1) @ w2 + b2  then  @ w3 + b3  ==  h @ (w2@w3) + (b2@w3+b3)
    g = jnp.dot(h.astype(bf16), w23_ref[...],
                preferred_element_type=jnp.float32) + b23_ref[...]
    g = jnp.maximum(g, 0.0)

    # generator Linear(128,1024) + Tanh.  tanh in bf16 (fast EUP on v6e/v7x).
    z = jnp.dot(g.astype(bf16), w4_ref[...],
                preferred_element_type=jnp.float32) + b4_ref[...]
    upd = jnp.tanh(z.astype(bf16)).astype(jnp.float32)

    # new_flat_weight = flat_weight + update_rate * update   (exact f32 path)
    out_ref[...] = flatw_ref[...] + upd * UPDATE_RATE


# ------------------------------- wrapper ------------------------------------
def _pick_m_tile(batch):
    """Rows per grid step: as large as possible (<= MAX_M_TILE) while keeping
    >= 2 grid steps when the batch allows (so v7x's 2 TensorCores both get
    work and the flat-weight DMA stays pipelined), rounded to a multiple of 8
    (sublane alignment)."""
    if batch >= 2 * MAX_M_TILE:
        return MAX_M_TILE
    if batch >= 16:
        return max(8, (batch // 2) // 8 * 8)
    return 8


def adaptive_weight_controller_batched(weights, conditions, params, m_tile=None):
    """weights: [B, *WEIGHT_SHAPE] f32, conditions: [B, CONDITION_DIM] f32.
    `params` is the output of fold_params()."""
    w1, b1, w23, b23, w4, b4 = params
    B = weights.shape[0]
    m_tile = _pick_m_tile(B) if m_tile is None else m_tile

    flat_w = weights.reshape(B, FLAT_DIM).astype(jnp.float32)
    cond = conditions.reshape(B, CONDITION_DIM).astype(jnp.float32)

    # Zero-pad the batch to a tile multiple (padded rows are sliced off below).
    pad = (-B) % m_tile
    if pad:
        flat_w = jnp.pad(flat_w, ((0, pad), (0, 0)))
        cond = jnp.pad(cond, ((0, pad), (0, 0)))
    b_pad = B + pad

    def stream(last):                 # streamed per-grid-step block
        return pl.BlockSpec((m_tile, last), lambda i: (i, 0))

    def resident(a):                  # constant index_map -> fetched once
        return pl.BlockSpec(a.shape, lambda i: (0, 0))

    out_flat = pl.pallas_call(
        _awc_kernel,
        out_shape=jax.ShapeDtypeStruct((b_pad, FLAT_DIM), jnp.float32),
        grid=(b_pad // m_tile,),
        in_specs=[
            stream(CONDITION_DIM),    # conditions   (streamed, f32)
            stream(FLAT_DIM),         # flat weights (streamed, f32)
            resident(w1), resident(b1),
            resident(w23), resident(b23),
            resident(w4), resident(b4),
        ],
        out_specs=stream(FLAT_DIM),
        # Alias the (jit-internal) flat-weight buffer onto the output: saves
        # an output allocation (note: not an HBM-bandwidth optimization).
        input_output_aliases={1: 0},
        compiler_params=pltpu.CompilerParams(
            # Batch axis is fully independent -> v7x shards it over 2 TCs.
            dimension_semantics=("parallel",),
        ),
    )(cond, flat_w, w1, b1, w23, b23, w4, b4)

    return out_flat[:B].reshape((B,) + WEIGHT_SHAPE)


def adaptive_weight_controller(weight, condition, params):
    """Original single-pair module semantics (one weight + one condition).
    Zero-pads a single row up to one tile instead of broadcasting 8 copies."""
    out = adaptive_weight_controller_batched(weight[None], condition[None], params)
    return out[0]


# --------------------------- parameter setup --------------------------------
def init_params(key):
    """Deterministic synthetic parameters (shapes match the PyTorch module)."""
    ks = jax.random.split(key, 8)

    def lin(kw, kb, fan_in, fan_out):
        bound = 1.0 / jnp.sqrt(fan_in)
        w = jax.random.uniform(kw, (fan_in, fan_out), jnp.float32, -bound, bound)
        b = jax.random.uniform(kb, (1, fan_out), jnp.float32, -bound, bound)
        return w, b

    w1, b1 = lin(ks[0], ks[1], CONDITION_DIM, HIDDEN_DIM)          # Linear(32, 64)
    w2, b2 = lin(ks[2], ks[3], HIDDEN_DIM, HIDDEN_DIM)             # Linear(64, 64)
    w3, b3 = lin(ks[4], ks[5], HIDDEN_DIM, HIDDEN_DIM * 2)         # Linear(64, 128)
    w4, b4 = lin(ks[6], ks[7], HIDDEN_DIM * 2, FLAT_DIM)           # Linear(128, 1024)
    return (w1, b1, w2, b2, w3, b3, w4, b4)


def fold_params(params):
    """One-time prep: fold w2@w3 (no nonlinearity between them) and choose
    dtypes — big matmul weights in bf16 (f32 accumulation in-kernel), the
    first tiny layer and all biases in f32."""
    w1, b1, w2, b2, w3, b3, w4, b4 = params
    w23 = jnp.dot(w2, w3).astype(jnp.bfloat16)                 # (64, 128)
    b23 = (jnp.dot(b2, w3) + b3).astype(jnp.float32)           # (1, 128)
    return (w1.astype(jnp.float32), b1.astype(jnp.float32),
            w23, b23,
            w4.astype(jnp.bfloat16), b4.astype(jnp.float32))


def reference(weight, condition, params):
    """Pure-JAX (f32, unfolded) reference of the PyTorch forward, single pair."""
    w1, b1, w2, b2, w3, b3, w4, b4 = params
    x = condition.reshape(1, -1)
    h = jnp.maximum(x @ w1 + b1, 0.0)
    enc = h @ w2 + b2
    g = jnp.maximum(enc @ w3 + b3, 0.0)
    upd = jnp.tanh(g @ w4 + b4)
    return (weight.reshape(1, -1) + upd * UPDATE_RATE).reshape(WEIGHT_SHAPE)


# --------------------------------- main --------------------------------------
if __name__ == "__main__":
    key = jax.random.PRNGKey(0)
    k_params, k_weight, k_cond = jax.random.split(key, 3)

    raw_params = init_params(k_params)
    params = fold_params(raw_params)

    B = 48                                    # small demo batch: m_tile=24, 2 grid steps
    weights = jax.random.normal(k_weight, (B,) + WEIGHT_SHAPE, jnp.float32)
    conditions = jax.random.normal(k_cond, (B, CONDITION_DIM), jnp.float32)

    # Reference computed first, from the unfolded f32 params.
    ref = jax.vmap(lambda w, c: reference(w, c, raw_params))(weights, conditions)

    run = jax.jit(functools.partial(adaptive_weight_controller_batched,
                                    params=params))
    out = jax.block_until_ready(run(weights, conditions))
    assert out.shape == (B,) + WEIGHT_SHAPE

    # Tighter check on the update path itself (review correctness concern):
    # the base-weight path is exact f32, so compare the normalized updates.
    upd_out = (out - weights) / UPDATE_RATE
    upd_ref = (ref - weights) / UPDATE_RATE
    err = float(jnp.max(jnp.abs(upd_out - upd_ref)))
    assert err < 2e-2, f"update mismatch: {err}"

    # Original single-pair module call signature (padded, not broadcast).
    out1 = jax.block_until_ready(
        adaptive_weight_controller(weights[0], conditions[0], params))
    ref1 = reference(weights[0], conditions[0], raw_params)
    err1 = float(jnp.max(jnp.abs((out1 - weights[0]) / UPDATE_RATE -
                                 (ref1 - weights[0]) / UPDATE_RATE)))
    assert out1.shape == WEIGHT_SHAPE
    assert err1 < 2e-2, f"single-pair update mismatch: {err1}"

    print("KERNEL_OK")
</pallas_src>

<mosaic_0001>
module attributes {stable_mosaic.version = 11 : i64} {
  func.func @_awc_kernel(%arg0: i32, %arg1: memref<24x32xf32, #tpu.memory_space<vmem>>, %arg2: memref<24x1024xf32, #tpu.memory_space<vmem>>, %arg3: memref<32x64xf32, #tpu.memory_space<vmem>>, %arg4: memref<1x64xf32, #tpu.memory_space<vmem>>, %arg5: memref<64x128xbf16, #tpu.memory_space<vmem>>, %arg6: memref<1x128xf32, #tpu.memory_space<vmem>>, %arg7: memref<128x1024xbf16, #tpu.memory_space<vmem>>, %arg8: memref<1x1024xf32, #tpu.memory_space<vmem>>, %arg9: memref<24x1024xf32, #tpu.memory_space<vmem>>) attributes {dimension_semantics = [#tpu.dimension_semantics<parallel>], iteration_bounds = array<i64: 2>, scalar_prefetch = 0 : i64, scratch_operands = 0 : i64, tpu.core_type = #tpu.core_type<tc>, window_params = [{transform_indices = @transform_0, window_bounds = array<i64: 24, 32>}, {transform_indices = @transform_1, window_bounds = array<i64: 24, 1024>}, {pipeline_mode = #tpu.pipeline_mode<synchronous>, transform_indices = @transform_2, window_bounds = array<i64: 32, 64>}, {pipeline_mode = #tpu.pipeline_mode<synchronous>, transform_indices = @transform_3, window_bounds = array<i64: 1, 64>}, {pipeline_mode = #tpu.pipeline_mode<synchronous>, transform_indices = @transform_4, window_bounds = array<i64: 64, 128>}, {pipeline_mode = #tpu.pipeline_mode<synchronous>, transform_indices = @transform_5, window_bounds = array<i64: 1, 128>}, {pipeline_mode = #tpu.pipeline_mode<synchronous>, transform_indices = @transform_6, window_bounds = array<i64: 128, 1024>}, {pipeline_mode = #tpu.pipeline_mode<synchronous>, transform_indices = @transform_7, window_bounds = array<i64: 1, 1024>}, {transform_indices = @transform_8, window_bounds = array<i64: 24, 1024>}]} {
    %c0 = arith.constant 0 : index
    %c0_0 = arith.constant 0 : index
    %0 = vector.load %arg1[%c0, %c0_0] : memref<24x32xf32, #tpu.memory_space<vmem>>, vector<24x32xf32>
    %c0_1 = arith.constant 0 : index
    %c0_2 = arith.constant 0 : index
    %1 = vector.load %arg3[%c0_1, %c0_2] : memref<32x64xf32, #tpu.memory_space<vmem>>, vector<32x64xf32>
    %cst = arith.constant dense<0.000000e+00> : vector<24x64xf32>
    %2 = tpu.matmul %0, %1, %cst {dimension_numbers = #tpu.dot_dimension_numbers<[1], [0], [0], [1], [0, 0, 1, 1], [], []>} : vector<24x32xf32>, vector<32x64xf32>, vector<24x64xf32> -> vector<24x64xf32>
    %c0_3 = arith.constant 0 : index
    %c0_4 = arith.constant 0 : index
    %3 = vector.load %arg4[%c0_3, %c0_4] : memref<1x64xf32, #tpu.memory_space<vmem>>, vector<1x64xf32>
    %4 = vector.broadcast %3 : vector<1x64xf32> to vector<24x64xf32>
    %5 = arith.addf %2, %4 : vector<24x64xf32>
    %cst_5 = arith.constant 0.000000e+00 : f32
    %6 = vector.broadcast %cst_5 : f32 to vector<24x64xf32>
    %7 = arith.maximumf %5, %6 : vector<24x64xf32>
    %8 = arith.truncf %7 : vector<24x64xf32> to vector<24x64xbf16>
    %c0_6 = arith.constant 0 : index
    %c0_7 = arith.constant 0 : index
    %9 = vector.load %arg5[%c0_6, %c0_7] : memref<64x128xbf16, #tpu.memory_space<vmem>>, vector<64x128xbf16>
    %cst_8 = arith.constant dense<0.000000e+00> : vector<24x128xf32>
    %10 = tpu.matmul %8, %9, %cst_8 {dimension_numbers = #tpu.dot_dimension_numbers<[1], [0], [0], [1], [0, 0, 1, 1], [], []>} : vector<24x64xbf16>, vector<64x128xbf16>, vector<24x128xf32> -> vector<24x128xf32>
    %c0_9 = arith.constant 0 : index
    %c0_10 = arith.constant 0 : index
    %11 = vector.load %arg6[%c0_9, %c0_10] : memref<1x128xf32, #tpu.memory_space<vmem>>, vector<1x128xf32>
    %12 = vector.broadcast %11 : vector<1x128xf32> to vector<24x128xf32>
    %13 = arith.addf %10, %12 : vector<24x128xf32>
    %cst_11 = arith.constant 0.000000e+00 : f32
    %14 = vector.broadcast %cst_11 : f32 to vector<24x128xf32>
    %15 = arith.maximumf %13, %14 : vector<24x128xf32>
    %16 = arith.truncf %15 : vector<24x128xf32> to vector<24x128xbf16>
    %c0_12 = arith.constant 0 : index
    %c0_13 = arith.constant 0 : index
    %17 = vector.load %arg7[%c0_12, %c0_13] : memref<128x1024xbf16, #tpu.memory_space<vmem>>, vector<128x1024xbf16>
    %cst_14 = arith.constant dense<0.000000e+00> : vector<24x1024xf32>
    %18 = tpu.matmul %16, %17, %cst_14 {dimension_numbers = #tpu.dot_dimension_numbers<[1], [0], [0], [1], [0, 0, 1, 1], [], []>} : vector<24x128xbf16>, vector<128x1024xbf16>, vector<24x1024xf32> -> vector<24x1024xf32>
    %c0_15 = arith.constant 0 : index
    %c0_16 = arith.constant 0 : index
    %19 = vector.load %arg8[%c0_15, %c0_16] : memref<1x1024xf32, #tpu.memory_space<vmem>>, vector<1x1024xf32>
    %20 = vector.broadcast %19 : vector<1x1024xf32> to vector<24x1024xf32>
    %21 = arith.addf %18, %20 : vector<24x1024xf32>
    %22 = arith.truncf %21 : vector<24x1024xf32> to vector<24x1024xbf16>
    %23 = math.tanh %22 : vector<24x1024xbf16>
    %24 = arith.extf %23 : vector<24x1024xbf16> to vector<24x1024xf32>
    %c0_17 = arith.constant 0 : index
    %c0_18 = arith.constant 0 : index
    %25 = vector.load %arg2[%c0_17, %c0_18] : memref<24x1024xf32, #tpu.memory_space<vmem>>, vector<24x1024xf32>
    %cst_19 = arith.constant 0.00999999977 : f32
    %26 = vector.broadcast %cst_19 : f32 to vector<24x1024xf32>
    %27 = arith.mulf %24, %26 : vector<24x1024xf32>
    %28 = arith.addf %25, %27 : vector<24x1024xf32>
    %c0_20 = arith.constant 0 : index
    %c0_21 = arith.constant 0 : index
    %29 = vector.load %arg9[%c0_20, %c0_21] : memref<24x1024xf32, #tpu.memory_space<vmem>>, vector<24x1024xf32>
    tpu.vector_store %arg9[%c0_20, %c0_21], %28 {strides = array<i32>} : memref<24x1024xf32, #tpu.memory_space<vmem>>, vector<24x1024xf32>,
    return
  }
  func.func @transform_0(%arg0: i32) -> (i32, i32) {
    %c0_i32 = arith.constant 0 : i32
    %c0_i32_0 = arith.constant 0 : i32
    return %arg0, %c0_i32 : i32, i32
  }
  func.func @transform_1(%arg0: i32) -> (i32, i32) {
    %c0_i32 = arith.constant 0 : i32
    %c0_i32_0 = arith.constant 0 : i32
    return %arg0, %c0_i32 : i32, i32
  }
  func.func @transform_2(%arg0: i32) -> (i32, i32) {
    %c0_i32 = arith.constant 0 : i32
    %c0_i32_0 = arith.constant 0 : i32
    %c0_i32_1 = arith.constant 0 : i32
    return %c0_i32, %c0_i32_0 : i32, i32
  }
  func.func @transform_3(%arg0: i32) -> (i32, i32) {
    %c0_i32 = arith.constant 0 : i32
    %c0_i32_0 = arith.constant 0 : i32
    %c0_i32_1 = arith.constant 0 : i32
    return %c0_i32, %c0_i32_0 : i32, i32
  }
  func.func @transform_4(%arg0: i32) -> (i32, i32) {
    %c0_i32 = arith.constant 0 : i32
    %c0_i32_0 = arith.constant 0 : i32
    %c0_i32_1 = arith.constant 0 : i32
    return %c0_i32, %c0_i32_0 : i32, i32
  }
  func.func @transform_5(%arg0: i32) -> (i32, i32) {
    %c0_i32 = arith.constant 0 : i32
    %c0_i32_0 = arith.constant 0 : i32
    %c0_i32_1 = arith.constant 0 : i32
    return %c0_i32, %c0_i32_0 : i32, i32
  }
  func.func @transform_6(%arg0: i32) -> (i32, i32) {
    %c0_i32 = arith.constant 0 : i32
    %c0_i32_0 = arith.constant 0 : i32
    %c0_i32_1 = arith.constant 0 : i32
    return %c0_i32, %c0_i32_0 : i32, i32
  }
  func.func @transform_7(%arg0: i32) -> (i32, i32) {
    %c0_i32 = arith.constant 0 : i32
    %c0_i32_0 = arith.constant 0 : i32
    %c0_i32_1 = arith.constant 0 : i32
    return %c0_i32, %c0_i32_0 : i32, i32
  }
  func.func @transform_8(%arg0: i32) -> (i32, i32) {
    %c0_i32 = arith.constant 0 : i32
    %c0_i32_0 = arith.constant 0 : i32
    return %arg0, %c0_i32 : i32, i32
  }
}

</mosaic_0001>

<bundles_post_ra>
// kernel: adaptive_weight_controller_batched.1
= control target key start
LH: loop header
LB: loop body
LE: loop exit
PB: predicated region body
PF: predicated region fallthrough
CT: control target
= control target key end

     0   :  { %s1631_s27 = smov 0   ;;  %s2022_s0 = inlined_call_operand.vmem [shape: f32[48,32], index: 0, kind: input, shape index: {}]   ;;  %s2023_s1 = inlined_call_operand.vmem [shape: f32[48,1024], index: 1, kind: input, shape index: {}, may-alias: {1,8}]   ;;  %s2024_s2 = inlined_call_operand.vmem [shape: f32[32,64], index: 2, kind: input, shape index: {}]   ;;  %s2025_s3 = inlined_call_operand.vmem [shape: f32[1,64], index: 3, kind: input, shape index: {}]   ;;  %s2026_s4 = inlined_call_operand.vmem [shape: bf16[64,128], index: 4, kind: input, shape index: {}]   ;;  %s2027_s5 = inlined_call_operand.vmem [shape: f32[1,128], index: 5, kind: input, shape index: {}]   ;;  %s2028_s6 = inlined_call_operand.vmem [shape: bf16[128,1024], index: 6, kind: input, shape index: {}]   ;;  %s2029_s7 = inlined_call_operand.vmem [shape: f32[1,1024], index: 7, kind: input, shape index: {}]   ;;  %s2030_s8 = inlined_call_operand.vmem [shape: f32[48,1024], index: 8, kind: output, shape index: {}, may-alias: {1,8}]  }
   0x1 LB: > { %s1397_s28 = sadd.s32 4294967295, %s1581_s27   ;;  %p1401_p0 = scmp.ge.s32.totalorder %s1581_s27, 1  ;;  %s1581_s27 = sphi %s1631_s27, %s18_s27  }
   0x2   : > { %p275_p1 = scmp.lt.s32.totalorder %s1581_s27, 3 }
   0x4   : > { %p276_p2 = pnand %p1401_p0, %p275_p1 }
   0x5   : > { %s316_s9 = smul.u32 (!%p276_p2), 3, %s1397_s28 }
   0x6   : > { %279 = sbr.rel (%p276_p2) target bundleno = 694 (0x2b6), region = 52 }
   0x7   : > { %p317_p3 = scmp.lt.s32.totalorder (!%p276_p2), %s316_s9, 5 }
   0xb   : > { %v343_v0 = vld [vmem:[%s2024_s2 + $0x18] sm:$0xff]  ;;  %v1583_v1 = vmov 0.0   ;;  %v342_v2 = vld [vmem:[%s2024_s2 + $0x10] sm:$0xff]  ;;  %vm1584_vm0 = vmmov 0   ;;  %v341_v3 = vld [vmem:[%s2024_s2 + $0x8] sm:$0xff]  ;;  %s2032_s9 = smov (!%p317_p3, %s316_s9), 5 }
   0xc   : > { %1499 = vmatprep.subr.mxu0 %v1583_v1  ;;  %1507 = vmatprep.mubr.msk.f32.mxu0 %vm1584_vm0, %v1583_v1  ;;  %v1539_v4 = vld [vmem:[%s2026_s4 + $0x18] sm:$0xff]   ;;  %v340_v5 = vld [vmem:[%s2024_s2] sm:$0xff]  ;;  %s1402_s18 = sshll.u32 %s2032_s9, 3  ;;  %vm351_vm1 = vcmask 261120   ;;  %v1540_v9 = vld [vmem:[%s2026_s4 + $0x10] sm:$0xff]   ;;  %vm485_vm2 = vcmask 523264  }
   0xd   : > { %1500 = vmatpush3.msra.mxu0 %v343_v0  ;;  %1516 = vmatprep.subr.bf16.mxu1 %v1539_v4  ;;  %s320_s21 = scalar_lea.vmem %s2022_s0, %s1402_s18  ;;  %v1541_v10 = vld [vmem:[%s2026_s4 + $0x8] sm:$0xff]   ;;  %v1542_v11 = vld [vmem:[%s2026_s4] sm:$0xff]   ;;  %s1484_s22 = sshll.u32 %s2032_s9, 6 }
   0xe   : > { %1501 = vmatprep.subr.mxu0 %v1583_v1  ;;  %1517 = vmatpush3.bf16.msra.mxu1 %v1539_v4  ;;  %v337_v6 = vld [vmem:[%s320_s21] sm:$0xff]  ;;  %v338_v7 = vld [vmem:[%s320_s21 + $0x8] sm:$0xff]  ;;  %v339_v8 = vld [vmem:[%s320_s21 + $0x10] sm:$0xff]  ;;  %s1911_s25 = scalar_lea.vmem %s2023_s1, %s1484_s22  ;;  %s1966_s29 = scalar_lea.vmem %s2030_s8, %s1484_s22 }
   0xf   : > { %1502 = vmatpush3.msra.mxu0 %v342_v2  ;;  %1518 = vmatprep.subr.bf16.mxu1 %v1540_v9  ;;  %v601_v12 = vld [vmem:[%s2028_s6 + $0x1c0] sm:$0xff]  ;;  %v602_v14 = vld [vmem:[%s2028_s6 + $0x1c8] sm:$0xff] }
  0x10   : > { %1503 = vmatprep.subr.mxu0 %v1583_v1  ;;  %v605_v13 = vld [vmem:[%s2028_s6 + $0x1e0] sm:$0xff]  ;;  %v606_v17 = vld [vmem:[%s2028_s6 + $0x1e8] sm:$0xff] }
  0x11   : > { %1504 = vmatpush3.msra.mxu0 %v341_v3  ;;  %v1474_v15 = vcombine.low %v601_v12, %v605_v13  ;;  %v1475_v16 = vcombine.high %v601_v12, %v605_v13  ;;  %v593_v18 = vld [vmem:[%s2028_s6 + $0x180] sm:$0xff]  ;;  %v1476_v20 = vcombine.low %v602_v14, %v606_v17  ;;  %v1477_v21 = vcombine.high %v602_v14, %v606_v17  ;;  %v594_v49 = vld [vmem:[%s2028_s6 + $0x188] sm:$0xff] }
  0x12   : > { %1505 = vmatprep.subr.mxu0 %v1583_v1  ;;  %1519 = vmatpush3.bf16.msra.mxu1 %v1540_v9  ;;  %v597_v19 = vld [vmem:[%s2028_s6 + $0x1a0] sm:$0xff]  ;;  %v598_v50 = vld [vmem:[%s2028_s6 + $0x1a8] sm:$0xff] }
  0x13   : > { %1506 = vmatpush3.msra.mxu0 %v340_v5  ;;  %1520 = vmatprep.subr.bf16.mxu1 %v1541_v10  ;;  %v1467_v22 = vcombine.high %v593_v18, %v597_v19  ;;  %v1466_v23 = vcombine.low %v593_v18, %v597_v19  ;;  %v585_v24 = vld [vmem:[%s2028_s6 + $0x140] sm:$0xff]  ;;  %v1469_v53 = vcombine.high %v594_v49, %v598_v50  ;;  %v586_v54 = vld [vmem:[%s2028_s6 + $0x148] sm:$0xff] }
  0x14   : > { %1508 = vmatmul.mubr.msk.f32.vlgmr.msra.gmra.mxu0 %vm351_vm1, %v337_v6  ;;  %971 = vmatprep.subr.bf16.mxu0 %v1475_v16  ;;  %v589_v25 = vld [vmem:[%s2028_s6 + $0x160] sm:$0xff]  ;;  %v590_v55 = vld [vmem:[%s2028_s6 + $0x168] sm:$0xff]  ;;  %v1468_v56 = vcombine.low %v594_v49, %v598_v50 }
  0x15   : > { %1510 = vmatprep.mubr.msk.f32.mxu0 %vm1584_vm0, %v1583_v1  ;;  %972 = vmatpush1.bf16.msra.mxu0 %v1474_v15  ;;  %v1459_v26 = vcombine.high %v585_v24, %v589_v25  ;;  %v1458_v27 = vcombine.low %v585_v24, %v589_v25  ;;  %v577_v28 = vld [vmem:[%s2028_s6 + $0x100] sm:$0xff]  ;;  %v1461_v57 = vcombine.high %v586_v54, %v590_v55  ;;  %v578_v58 = vld [vmem:[%s2028_s6 + $0x108] sm:$0xff] }
  0x16   : > { %1521 = vmatpush3.bf16.msra.mxu1 %v1541_v10  ;;  %973 = vmatprep.subr.bf16.mxu0 %v1467_v22  ;;  %v581_v29 = vld [vmem:[%s2028_s6 + $0x120] sm:$0xff]  ;;  %v582_v59 = vld [vmem:[%s2028_s6 + $0x128] sm:$0xff]  ;;  %v1460_v60 = vcombine.low %v586_v54, %v590_v55  ;;  %v591_v54 = vld [vmem:[%s2028_s6 + $0x170] sm:$0xff] }
  0x17   : > { %1522 = vmatprep.subr.bf16.mxu1 %v1542_v11  ;;  %v1451_v30 = vcombine.high %v577_v28, %v581_v29  ;;  %v1450_v31 = vcombine.low %v577_v28, %v581_v29  ;;  %v569_v32 = vld [vmem:[%s2028_s6 + $0xc0] sm:$0xff]  ;;  %v1453_v61 = vcombine.high %v578_v58, %v582_v59  ;;  %v570_v62 = vld [vmem:[%s2028_s6 + $0xc8] sm:$0xff]  ;;  %v1452_v0 = vcombine.low %v578_v58, %v582_v59  ;;  %v607_v28 = vld [vmem:[%s2028_s6 + $0x1f0] sm:$0xff] }
  0x18   : > { %1511 = vmatmul.mubr.msk.f32.gmra.mxu0 %vm351_vm1, %v338_v7  ;;  %v573_v33 = vld [vmem:[%s2028_s6 + $0xe0] sm:$0xff]  ;;  %v574_v63 = vld [vmem:[%s2028_s6 + $0xe8] sm:$0xff]  ;;  %v604_v29 = vld [vmem:[%s2028_s6 + $0x1d8] sm:$0xff] }
  0x19   : > { %1513 = vmatprep.mubr.msk.f32.mxu0 %vm1584_vm0, %v1583_v1  ;;  %974 = vmatpush1.bf16.msra.mxu0 %v1466_v23  ;;  %v1443_v34 = vcombine.high %v569_v32, %v573_v33  ;;  %v1442_v35 = vcombine.low %v569_v32, %v573_v33  ;;  %v1407_v38 = vld [vmem:[%s2025_s3] ss:$0 sm:$0xff]  ;;  %v1445_v1 = vcombine.high %v570_v62, %v574_v63  ;;  %v562_v5 = vld [vmem:[%s2028_s6 + $0x88] sm:$0xff]  ;;  %v588_v55 = vld [vmem:[%s2028_s6 + $0x158] sm:$0xff] }
  0x1a   : > { %1523 = vmatpush3.bf16.msra.mxu1 %v1542_v11  ;;  %975 = vmatprep.subr.bf16.mxu0 %v1459_v26  ;;  %v1444_v2 = vcombine.low %v570_v62, %v574_v63  ;;  %v561_v3 = vld [vmem:[%s2028_s6 + $0x80] sm:$0xff]  ;;  %v566_v7 = vld [vmem:[%s2028_s6 + $0xa8] sm:$0xff]  ;;  %v579_v62 = vld [vmem:[%s2028_s6 + $0x110] sm:$0xff] }
  0x1b   : > { %1022 = vmatprep.subr.bf16.mxu1 %v1477_v21  ;;  %v565_v4 = vld [vmem:[%s2028_s6 + $0xa0] sm:$0xff]  ;;  %v1436_v9 = vcombine.low %v562_v5, %v566_v7  ;;  %v1437_v10 = vcombine.high %v562_v5, %v566_v7  ;;  %v554_v13 = vld [vmem:[%s2028_s6 + $0x48] sm:$0xff]  ;;  %v583_v63 = vld [vmem:[%s2028_s6 + $0x130] sm:$0xff] }
  0x1c   : > { %1514 = vmatmul.mubr.msk.f32.gmra.mxu0 %vm351_vm1, %v339_v8  ;;  %v1435_v6 = vcombine.high %v561_v3, %v565_v4  ;;  %v1434_v8 = vcombine.low %v561_v3, %v565_v4  ;;  %v553_v11 = vld [vmem:[%s2028_s6 + $0x40] sm:$0xff]  ;;  %v558_v15 = vld [vmem:[%s2028_s6 + $0x68] sm:$0xff]  ;;  %v1455_v5 = vcombine.high %v579_v62, %v583_v63  ;;  %v571_v7 = vld [vmem:[%s2028_s6 + $0xd0] sm:$0xff] }
  0x1d   : > { %976 = vmatpush1.bf16.msra.mxu0 %v1458_v27  ;;  %v557_v12 = vld [vmem:[%s2028_s6 + $0x60] sm:$0xff]  ;;  %v1428_v17 = vcombine.low %v554_v13, %v558_v15  ;;  %v1429_v18 = vcombine.high %v554_v13, %v558_v15  ;;  %v546_v21 = vld [vmem:[%s2028_s6 + $0x8] sm:$0xff]  ;;  %v603_v27 = vld [vmem:[%s2028_s6 + $0x1d0] sm:$0xff] }
  0x1e   : > { %977 = vmatprep.subr.bf16.mxu0 %v1451_v30  ;;  %v1427_v14 = vcombine.high %v553_v11, %v557_v12  ;;  %v1426_v16 = vcombine.low %v553_v11, %v557_v12  ;;  %v545_v19 = vld [vmem:[%s2028_s6] sm:$0xff]  ;;  %v550_v23 = vld [vmem:[%s2028_s6 + $0x28] sm:$0xff]  ;;  %v1479_v30 = vcombine.high %v603_v27, %v607_v28  ;;  %v1478_v32 = vcombine.low %v603_v27, %v607_v28  ;;  %v563_v15 = vld [vmem:[%s2028_s6 + $0x90] sm:$0xff] }
  0x1f   : > { %v1420_v25 = vcombine.low %v546_v21, %v550_v23  ;;  %v1421_v26 = vcombine.high %v546_v21, %v550_v23  ;;  %v1454_v11 = vcombine.low %v579_v62, %v583_v63  ;;  %v555_v23 = vld [vmem:[%s2028_s6 + $0x50] sm:$0xff] }
  0x21   : > { %978 = vmatpush1.bf16.msra.mxu0 %v1450_v31  ;;  %v608_v31 = vld [vmem:[%s2028_s6 + $0x1f8] sm:$0xff] }
  0x22   : > { %979 = vmatprep.subr.bf16.mxu0 %v1443_v34  ;;  %v1480_v33 = vcombine.low %v604_v29, %v608_v31  ;;  %v1481_v34 = vcombine.high %v604_v29, %v608_v31  ;;  %v547_v31 = vld [vmem:[%s2028_s6 + $0x10] sm:$0xff] }
  0x25   : > { %980 = vmatpush1.bf16.msra.mxu0 %v1442_v35  ;;  %v1585_v35 = vmov 0  }
  0x26   : > { %981 = vmatprep.subr.bf16.mxu0 %v1435_v6  ;;  %1003 = vmatprep.mubr.bf16.mxu0 %v1585_v35 }
  0x29   : > { %982 = vmatpush1.bf16.msra.mxu0 %v1434_v8  ;;  %v575_v8 = vld [vmem:[%s2028_s6 + $0xf0] sm:$0xff] }
  0x2a   : > { %983 = vmatprep.subr.bf16.mxu0 %v1427_v14  ;;  %v1447_v13 = vcombine.high %v571_v7, %v575_v8 }
  0x2d   : > { %984 = vmatpush1.bf16.msra.mxu0 %v1426_v16  ;;  %v567_v16 = vld [vmem:[%s2028_s6 + $0xb0] sm:$0xff] }
  0x2e   : > { %v1439_v21 = vcombine.high %v563_v15, %v567_v16  ;;  %v1438_v27 = vcombine.low %v563_v15, %v567_v16 }
  0xd4   : > { %v427_v36 = vpop.f32.mrf.mxu0 }
  0xd5   : > { %v428_v39 = vadd.f32 %v1407_v38, %v427_v36 }
  0xd6   : > { %v1509_v37 = vpop.f32.mrf.mxu0 }
  0xd7   : > { %v441_v43 = vmax.f32 %v428_v39, 0.0 }
  0xd8   : > { %v432_v40 = vpop.f32.mrf.mxu0 }
  0xd9   : > { %v433_v41 = vadd.f32 %v1407_v38, %v432_v40 }
  0xda   : > { %v1512_v42 = vpop.f32.mrf.mxu0 }
  0xdb   : > { %v442_v44 = vmax.f32 %v433_v41, 0.0 }
  0xdc   : > { %v437_v45 = vpop.f32.mrf.mxu0 }
  0xdd   : > { %v438_v46 = vadd.f32 %v1407_v38, %v437_v45  ;;  %v444_v47 = vpack.c.bf16 %v442_v44, %v441_v43  ;;  %v1411_v38 = vld [vmem:[%s2027_s5] ss:$0 sm:$0xff]  ;;  %v595_v43 = vld [vmem:[%s2028_s6 + $0x190] sm:$0xff]  ;;  %v596_v45 = vld [vmem:[%s2028_s6 + $0x198] sm:$0xff] }
  0xde   : > { %v1515_v48 = vpop.f32.mrf.mxu0  ;;  %v599_v44 = vld [vmem:[%s2028_s6 + $0x1b0] sm:$0xff] }
  0xdf   : > { %v443_v51 = vmax.f32 %v438_v46, 0.0  ;;  %1524 = vmatprep.mubr.msk.bf16.mxu1 %vm485_vm2, %v444_v47  ;;  %v600_v46 = vld [vmem:[%s2028_s6 + $0x1b8] sm:$0xff] }
  0xe0   : > { %v1472_v58 = vcombine.low %v596_v45, %v600_v46 }
  0xe1   : > { %v445_v52 = vpack.c.bf16 %v443_v51, %v443_v51  ;;  %v1471_v51 = vcombine.high %v595_v43, %v599_v44 }
  0xe3   : > { %1525 = vmatmul.mubr.msk.bf16.vlgmr.msra.gmra.mxu1 %vm485_vm2, %v445_v52  ;;  %v1473_v52 = vcombine.high %v596_v45, %v600_v46  ;;  %v1897_v46 = vld [vmem:[%s2029_s7] sm:$0xff] }
  0xe4   : > { %1023 = vmatpush1.bf16.msra.mxu1 %v1476_v20  ;;  %v549_v20 = vld [vmem:[%s2028_s6 + $0x20] sm:$0xff]  ;;  %1054 = vmatprep.mubr.bf16.mxu1 %v1585_v35 }
  0xe5   : > { %1024 = vmatprep.subr.bf16.mxu1 %v1469_v53  ;;  %v1419_v22 = vcombine.high %v545_v19, %v549_v20  ;;  %v1418_v24 = vcombine.low %v545_v19, %v549_v20  ;;  %v587_v53 = vld [vmem:[%s2028_s6 + $0x150] sm:$0xff]  ;;  %v1446_v19 = vcombine.low %v571_v7, %v575_v8 }
  0xe7   : > { %985 = vmatprep.subr.bf16.mxu0 %v1419_v22 }
  0xe8   : > { %1025 = vmatpush1.bf16.msra.mxu1 %v1468_v56  ;;  %986 = vmatpush1.bf16.msra.mxu0 %v1418_v24  ;;  %v592_v56 = vld [vmem:[%s2028_s6 + $0x178] sm:$0xff]  ;;  %v559_v24 = vld [vmem:[%s2028_s6 + $0x70] sm:$0xff] }
  0xe9   : > { %1026 = vmatprep.subr.bf16.mxu1 %v1461_v57  ;;  %1073 = vmatprep.subr.bf16.mxu0 %v1479_v30  ;;  %v1470_v57 = vcombine.low %v595_v43, %v599_v44  ;;  %v1464_v3 = vcombine.low %v588_v55, %v592_v56  ;;  %v1431_v29 = vcombine.high %v555_v23, %v559_v24 }
  0xec   : > { %1027 = vmatpush1.bf16.msra.mxu1 %v1460_v60  ;;  %v1463_v60 = vcombine.high %v587_v53, %v591_v54 }
  0xed   : > { %1028 = vmatprep.subr.bf16.mxu1 %v1453_v61  ;;  %v1465_v61 = vcombine.high %v588_v55, %v592_v56 }
  0xf0   : > { %1029 = vmatpush1.bf16.msra.mxu1 %v1452_v0  ;;  %v580_v0 = vld [vmem:[%s2028_s6 + $0x118] sm:$0xff] }
  0xf1   : > { %1030 = vmatprep.subr.bf16.mxu1 %v1445_v1  ;;  %v584_v1 = vld [vmem:[%s2028_s6 + $0x138] sm:$0xff] }
  0xf2   : > { %v1457_v6 = vcombine.high %v580_v0, %v584_v1  ;;  %v1456_v12 = vcombine.low %v580_v0, %v584_v1 }
  0xf4   : > { %1031 = vmatpush1.bf16.msra.mxu1 %v1444_v2  ;;  %v1462_v2 = vcombine.low %v587_v53, %v591_v54 }
  0xf5   : > { %1032 = vmatprep.subr.bf16.mxu1 %v1437_v10  ;;  %v576_v10 = vld [vmem:[%s2028_s6 + $0xf8] sm:$0xff] }
  0xf8   : > { %1033 = vmatpush1.bf16.msra.mxu1 %v1436_v9  ;;  %v572_v9 = vld [vmem:[%s2028_s6 + $0xd8] sm:$0xff] }
  0xf9   : > { %1034 = vmatprep.subr.bf16.mxu1 %v1429_v18  ;;  %v1449_v14 = vcombine.high %v572_v9, %v576_v10  ;;  %v568_v18 = vld [vmem:[%s2028_s6 + $0xb8] sm:$0xff]  ;;  %v1448_v20 = vcombine.low %v572_v9, %v576_v10 }
  0xfc   : > { %1035 = vmatpush1.bf16.msra.mxu1 %v1428_v17  ;;  %v564_v17 = vld [vmem:[%s2028_s6 + $0x98] sm:$0xff] }
  0xfd   : > { %1036 = vmatprep.subr.bf16.mxu1 %v1421_v26  ;;  %v1441_v22 = vcombine.high %v564_v17, %v568_v18  ;;  %v560_v26 = vld [vmem:[%s2028_s6 + $0x78] sm:$0xff]  ;;  %v1440_v28 = vcombine.low %v564_v17, %v568_v18 }
 0x100   : > { %1037 = vmatpush1.bf16.msra.mxu1 %v1420_v25  ;;  %v556_v25 = vld [vmem:[%s2028_s6 + $0x58] sm:$0xff] }
 0x101   : > { %1124 = vmatprep.subr.bf16.mxu1 %v1481_v34  ;;  %v1433_v30 = vcombine.high %v556_v25, %v560_v26  ;;  %v552_v34 = vld [vmem:[%s2028_s6 + $0x38] sm:$0xff] }
 0x1a3   : > { %v1526_v36 = vpop.f32.mrf.mxu1 }
 0x1a4   : > { %v535_v49 = vadd.f32 %v1526_v36, %v1411_v38  ;;  %v1430_v36 = vcombine.low %v555_v23, %v559_v24 }
 0x1a5   : > { %v526_v37 = vpop.f32.mrf.mxu1 }
 0x1a6   : > { %v527_v40 = vadd.f32 %v1411_v38, %v526_v37  ;;  %v542_v59 = vmax.f32 %v535_v49, 0.0  ;;  %v1432_v37 = vcombine.low %v556_v25, %v560_v26  ;;  %v1231_v25 = vld [vmem:[%s1911_s25] sm:$0xff] }
 0x1a7   : > { %v1527_v39 = vpop.f32.mrf.mxu1 }
 0x1a8   : > { %v540_v47 = vmax.f32 %v527_v40, 0.0  ;;  %v1830_v4 = vpack.c.bf16 %v542_v59, %v542_v59 }
 0x1a9   : > { %v529_v41 = vpop.f32.mrf.mxu1 }
 0x1aa   : > { %v530_v42 = vadd.f32 %v1411_v38, %v529_v41 }
 0x1ac   : > { %v541_v48 = vmax.f32 %v530_v42, 0.0  ;;  %v611_v42 = vlaneseq }
 0x1ae   : > { %v1800_v50 = vpack.c.bf16 %v541_v48, %v540_v47  ;;  %v1890_v43 = vshrl.u32 %v611_v42, 7  ;;  %v1240_v42 = vld [vmem:[%s1911_s25 + $0x48] sm:$0xff] }
 0x1b0   : > { %1004 = vmatmul.mubr.bf16.vlgmr.msra.gmra.mxu0 %v1800_v50  ;;  %1055 = vmatmul.mubr.bf16.vlgmr.msra.gmra.mxu1 %v1800_v50  ;;  %v613_v44 = vsub.s32 0, %v1890_v43  ;;  %v621_v45 = vsub.s32 2, %v1890_v43  ;;  %v617_v47 = vsub.s32 1, %v1890_v43 }
 0x1b1   : > { %1074 = vmatpush1.bf16.msra.mxu0 %v1478_v32  ;;  %1125 = vmatpush1.bf16.msra.mxu1 %v1480_v33  ;;  %v551_v32 = vld [vmem:[%s2028_s6 + $0x30] sm:$0xff]  ;;  %v548_v33 = vld [vmem:[%s2028_s6 + $0x18] sm:$0xff] }
 0x1b2   : > { %1075 = vmatprep.subr.bf16.mxu0 %v1471_v51  ;;  %1126 = vmatprep.subr.bf16.mxu1 %v1473_v52  ;;  %v1423_v38 = vcombine.high %v547_v31, %v551_v32  ;;  %v1425_v39 = vcombine.high %v548_v33, %v552_v34  ;;  %v1422_v40 = vcombine.low %v547_v31, %v551_v32  ;;  %v629_v32 = vsub.s32 4, %v1890_v43 }
 0x1b3   : > { %1013 = vmatprep.mubr.bf16.mxu0 %v1585_v35  ;;  %1064 = vmatprep.mubr.bf16.mxu1 %v1585_v35  ;;  %v1424_v41 = vcombine.low %v548_v33, %v552_v34  ;;  %v622_v51 = vrot.slane %v1897_v46, %v621_v45  ;;  %v618_v52 = vrot.slane %v1897_v46, %v617_v47  ;;  %v637_v33 = vsub.s32 6, %v1890_v43  ;;  %v1936_v45 = vld [vmem:[%s1911_s25 + $0x60] sm:$0xff]  ;;  %v1939_v47 = vld [vmem:[%s1911_s25 + $0x68] sm:$0xff] }
 0x1b5   : > { %1076 = vmatpush1.bf16.msra.mxu0 %v1470_v57  ;;  %1127 = vmatpush1.bf16.msra.mxu1 %v1472_v58 }
 0x1b6   : > { %1077 = vmatprep.subr.bf16.mxu0 %v1463_v60  ;;  %1128 = vmatprep.subr.bf16.mxu1 %v1465_v61 }
 0x1b8   : > { %1014 = vmatmul.mubr.bf16.gmra.mxu0 %v1830_v4  ;;  %1065 = vmatmul.mubr.bf16.gmra.mxu1 %v1830_v4 }
 0x1b9   : > { %1078 = vmatpush1.bf16.msra.mxu0 %v1462_v2  ;;  %1129 = vmatpush1.bf16.msra.mxu1 %v1464_v3 }
 0x1ba   : > { %1079 = vmatprep.subr.bf16.mxu0 %v1455_v5  ;;  %1130 = vmatprep.subr.bf16.mxu1 %v1457_v6 }
 0x1bb   : > { %1105 = vmatprep.mubr.bf16.mxu0 %v1585_v35  ;;  %1156 = vmatprep.mubr.bf16.mxu1 %v1585_v35 }
 0x1bd   : > { %1080 = vmatpush1.bf16.msra.mxu0 %v1454_v11  ;;  %1131 = vmatpush1.bf16.msra.mxu1 %v1456_v12 }
 0x1be   : > { %1081 = vmatprep.subr.bf16.mxu0 %v1447_v13  ;;  %1132 = vmatprep.subr.bf16.mxu1 %v1449_v14 }
 0x1c1   : > { %1082 = vmatpush1.bf16.msra.mxu0 %v1446_v19  ;;  %1133 = vmatpush1.bf16.msra.mxu1 %v1448_v20 }
 0x1c2   : > { %1083 = vmatprep.subr.bf16.mxu0 %v1439_v21  ;;  %1134 = vmatprep.subr.bf16.mxu1 %v1441_v22 }
 0x1c5   : > { %1084 = vmatpush1.bf16.msra.mxu0 %v1438_v27  ;;  %1135 = vmatpush1.bf16.msra.mxu1 %v1440_v28  ;;  %v1233_v27 = vld [vmem:[%s1911_s25 + $0x10] sm:$0xff]  ;;  %v1239_v28 = vld [vmem:[%s1911_s25 + $0x40] sm:$0xff] }
 0x1c6   : > { %1085 = vmatprep.subr.bf16.mxu0 %v1431_v29  ;;  %1136 = vmatprep.subr.bf16.mxu1 %v1433_v30  ;;  %v1241_v29 = vld [vmem:[%s1911_s25 + $0x50] sm:$0xff] }
 0x1c9   : > { %1086 = vmatpush1.bf16.msra.mxu0 %v1430_v36  ;;  %1137 = vmatpush1.bf16.msra.mxu1 %v1432_v37  ;;  %v1232_v36 = vld [vmem:[%s1911_s25 + $0x8] sm:$0xff]  ;;  %v1234_v37 = vld [vmem:[%s1911_s25 + $0x18] sm:$0xff] }
 0x1ca   : > { %1087 = vmatprep.subr.bf16.mxu0 %v1423_v38  ;;  %1138 = vmatprep.subr.bf16.mxu1 %v1425_v39  ;;  %v1922_v38 = vld [vmem:[%s1911_s25 + $0x20] sm:$0xff]  ;;  %v1925_v39 = vld [vmem:[%s1911_s25 + $0x28] sm:$0xff] }
 0x1cd   : > { %1088 = vmatpush1.bf16.msra.mxu0 %v1422_v40  ;;  %1139 = vmatpush1.bf16.msra.mxu1 %v1424_v41  ;;  %v1928_v40 = vld [vmem:[%s1911_s25 + $0x30] sm:$0xff]  ;;  %v1931_v41 = vld [vmem:[%s1911_s25 + $0x38] sm:$0xff] }
 0x1d0   : > { %1106 = vmatmul.mubr.bf16.vlgmr.msra.gmra.mxu0 %v1800_v50  ;;  %1157 = vmatmul.mubr.bf16.vlgmr.msra.gmra.mxu1 %v1800_v50  ;;  %v614_v50 = vrot.slane %v1897_v46, %v613_v44  ;;  %v1242_v44 = vld [vmem:[%s1911_s25 + $0x58] sm:$0xff] }
 0x1d1   : > { %1115 = vmatprep.mubr.bf16.mxu0 %v1585_v35  ;;  %1166 = vmatprep.mubr.bf16.mxu1 %v1585_v35  ;;  %v625_v35 = vsub.s32 3, %v1890_v43 }
 0x1d3   : > { %v626_v54 = vrot.slane %v1897_v46, %v625_v35  ;;  %v1942_v35 = vld [vmem:[%s1911_s25 + $0x70] sm:$0xff] }
 0x1d8   : > { %1116 = vmatmul.mubr.bf16.gmra.mxu0 %v1830_v4  ;;  %1167 = vmatmul.mubr.bf16.gmra.mxu1 %v1830_v4 }
 0x270   : > { %v1005_v48 = vpop.f32.mrf.mxu0  ;;  %v1056_v49 = vpop.f32.mrf.mxu1 }
 0x271   : > { %v1006_v58 = vadd.f32 %v1005_v48, %v614_v50  ;;  %v1057_v59 = vadd.f32 %v1056_v49, %v622_v51  ;;  %v1945_v48 = vld [vmem:[%s1911_s25 + $0x78] sm:$0xff]  ;;  %v1247_v49 = vld [vmem:[%s1911_s25 + $0x80] sm:$0xff] }
 0x272   : > { %v1007_v53 = vpop.f32.mrf.mxu0  ;;  %v1058_v55 = vpop.f32.mrf.mxu1 }
 0x273   : > { %v1008_v62 = vadd.f32 %v1007_v53, %v618_v52  ;;  %v1059_v63 = vadd.f32 %v1058_v55, %v626_v54  ;;  %v633_v55 = vsub.s32 5, %v1890_v43 }
 0x274   : > { %v1009_v56 = vpop.f32.mrf.mxu0  ;;  %v1060_v57 = vpop.f32.mrf.mxu1 }
 0x275   : > { %v1010_v60 = vadd.f32 %v1009_v56, %v614_v50  ;;  %v1061_v61 = vadd.f32 %v1060_v57, %v622_v51  ;;  %v641_v56 = vsub.s32 7, %v1890_v43 }
 0x276   : > { %v1011_v0 = vpop.f32.mrf.mxu0  ;;  %v1062_v1 = vpop.f32.mrf.mxu1 }
 0x277   : > { %v1175_v2 = vpack.c.bf16 %v1010_v60, %v1006_v58  ;;  %v1177_v3 = vpack.c.bf16 %v1061_v61, %v1057_v59  ;;  %v1012_v4 = vadd.f32 %v1011_v0, %v618_v52  ;;  %v1063_v5 = vadd.f32 %v1062_v1, %v626_v54  ;;  %v1956_v58 = vld [vmem:[%s1911_s25 + $0xa0] sm:$0xff]  ;;  %v1959_v59 = vld [vmem:[%s1911_s25 + $0xa8] sm:$0xff]  ;;  %v1969_v1 = vld [vmem:[%s1911_s25 + $0xb0] sm:$0xff] }
 0x278   : > { %v1015_v6 = vpop.f32.mrf.mxu0  ;;  %v1066_v7 = vpop.f32.mrf.mxu1 }
 0x279   : > { %1543 = vtanh.bf16 %v1175_v2  ;;  %v1176_v8 = vpack.c.bf16 %v1012_v4, %v1008_v62  ;;  %v1178_v9 = vpack.c.bf16 %v1063_v5, %v1059_v63  ;;  %v1016_v10 = vadd.f32 %v1015_v6, %v614_v50  ;;  %v1949_v50 = vld [vmem:[%s1911_s25 + $0x88] sm:$0xff]  ;;  %v1972_v2 = vld [vmem:[%s1911_s25 + $0xb8] sm:$0xff] }
 0x27a   : > { %1545 = vtanh.bf16 %v1177_v3  ;;  %v1067_v11 = vadd.f32 %v1066_v7, %v622_v51  ;;  %v1017_v12 = vpop.f32.mrf.mxu0  ;;  %v1068_v13 = vpop.f32.mrf.mxu1  ;;  %v1249_v51 = vld [vmem:[%s1911_s25 + $0x90] sm:$0xff] }
 0x27b   : > { %1547 = vtanh.bf16 %v1176_v8  ;;  %v1183_v14 = vpack.c.bf16 %v1016_v10, %v1016_v10  ;;  %v1018_v15 = vadd.f32 %v1017_v12, %v618_v52  ;;  %v1069_v16 = vadd.f32 %v1068_v13, %v626_v54  ;;  %v1250_v52 = vld [vmem:[%s1911_s25 + $0x98] sm:$0xff] }
 0x27c   : > { %1549 = vtanh.bf16 %v1178_v9  ;;  %v1185_v17 = vpack.c.bf16 %v1067_v11, %v1067_v11  ;;  %v1019_v18 = vpop.f32.mrf.mxu0  ;;  %v1070_v19 = vpop.f32.mrf.mxu1 }
 0x27d   : > { %1551 = vtanh.bf16 %v1183_v14  ;;  %v1184_v20 = vpack.c.bf16 %v1018_v15, %v1018_v15  ;;  %v1186_v21 = vpack.c.bf16 %v1069_v16, %v1069_v16 }
 0x27e   : > { %1553 = vtanh.bf16 %v1185_v17  ;;  %v1020_v22 = vpop.f32.mrf.mxu0  ;;  %v1071_v23 = vpop.f32.mrf.mxu1 }
 0x27f   : > { %1555 = vtanh.bf16 %v1184_v20 }
 0x280   : > { %1557 = vtanh.bf16 %v1186_v21 }
 0x287   : > { %v1544_v24 = vpop.eup %1543 }
 0x288   : > { %v1546_v26 = vpop.eup %1545  ;;  %v1207_v30 = vunpack.c.l.bf16 %v1544_v24  ;;  %v1215_v31 = vunpack.c.h.bf16 %v1544_v24 }
 0x289   : > { %v1548_v34 = vpop.eup %1547  ;;  %v1209_v53 = vunpack.c.l.bf16 %v1546_v26  ;;  %v1217_v54 = vunpack.c.h.bf16 %v1546_v26 }
 0x28a   : > { %v1550_v57 = vpop.eup %1549  ;;  %v1255_v60 = vmul.f32 0.01, %v1207_v30  ;;  %v1263_v61 = vmul.f32 0.01, %v1215_v31  ;;  %v1208_v62 = vunpack.c.l.bf16 %v1548_v34  ;;  %v1216_v63 = vunpack.c.h.bf16 %v1548_v34 }
 0x28b   : > { %v1552_v0 = vpop.eup %1551  ;;  %v1257_v3 = vmul.f32 0.01, %v1209_v53  ;;  %v1265_v4 = vmul.f32 0.01, %v1217_v54  ;;  %v1210_v5 = vunpack.c.l.bf16 %v1550_v57  ;;  %v1218_v6 = vunpack.c.h.bf16 %v1550_v57 }
 0x28c   : > { %v1554_v7 = vpop.eup %1553  ;;  %v1279_v8 = vadd.f32 %v1255_v60, %v1231_v25  ;;  %v1287_v9 = vadd.f32 %v1263_v61, %v1239_v28  ;;  %v1256_v10 = vmul.f32 0.01, %v1208_v62  ;;  %v1264_v11 = vmul.f32 0.01, %v1216_v63 }
 0x28d   : > { %v1556_v12 = vpop.eup %1555  ;;  %v1281_v13 = vadd.f32 %v1257_v3, %v1233_v27  ;;  %v1289_v14 = vadd.f32 %v1265_v4, %v1241_v29  ;;  %v1258_v15 = vmul.f32 0.01, %v1210_v5  ;;  %v1266_v16 = vmul.f32 0.01, %v1218_v6 }
 0x28e   : > { %v1558_v17 = vpop.eup %1557  ;;  %1303 = vst [vmem:[%s1966_s29] sm:$0xff] %v1279_v8  ;;  %1311 = vst [vmem:[%s1966_s29 + $0x40] sm:$0xff] %v1287_v9  ;;  %v1280_v18 = vadd.f32 %v1256_v10, %v1232_v36  ;;  %v1288_v19 = vadd.f32 %v1264_v11, %v1240_v42  ;;  %v1223_v20 = vunpack.c.l.bf16 %v1552_v0  ;;  %v1225_v21 = vunpack.c.l.bf16 %v1554_v7 }
 0x28f   : > { %1305 = vst [vmem:[%s1966_s29 + $0x10] sm:$0xff] %v1281_v13  ;;  %1313 = vst [vmem:[%s1966_s29 + $0x50] sm:$0xff] %v1289_v14  ;;  %v1282_v22 = vadd.f32 %v1258_v15, %v1234_v37  ;;  %v1290_v23 = vadd.f32 %v1266_v16, %v1242_v44  ;;  %v1224_v24 = vunpack.c.l.bf16 %v1556_v12  ;;  %v1226_v25 = vunpack.c.l.bf16 %v1558_v17 }
 0x290   : > { %1304 = vst [vmem:[%s1966_s29 + $0x8] sm:$0xff] %v1280_v18  ;;  %1312 = vst [vmem:[%s1966_s29 + $0x48] sm:$0xff] %v1288_v19  ;;  %v1271_v26 = vmul.f32 0.01, %v1223_v20  ;;  %v1273_v27 = vmul.f32 0.01, %v1225_v21  ;;  %v1107_v28 = vpop.f32.mrf.mxu0  ;;  %v1158_v29 = vpop.f32.mrf.mxu1  ;;  %v630_v34 = vrot.slane %v1897_v46, %v629_v32  ;;  %v638_v36 = vrot.slane %v1897_v46, %v637_v33 }
 0x291   : > { %1306 = vst [vmem:[%s1966_s29 + $0x18] sm:$0xff] %v1282_v22  ;;  %1314 = vst [vmem:[%s1966_s29 + $0x58] sm:$0xff] %v1290_v23  ;;  %v1272_v30 = vmul.f32 0.01, %v1224_v24  ;;  %v1274_v31 = vmul.f32 0.01, %v1226_v25  ;;  %v634_v44 = vrot.slane %v1897_v46, %v633_v55  ;;  %v642_v54 = vrot.slane %v1897_v46, %v641_v56 }
 0x292   : > { %v1295_v37 = vadd.f32 %v1271_v26, %v1247_v49  ;;  %v1297_v42 = vadd.f32 %v1273_v27, %v1249_v51  ;;  %v1109_v53 = vpop.f32.mrf.mxu0  ;;  %v1160_v57 = vpop.f32.mrf.mxu1  ;;  %v1108_v43 = vadd.f32 %v1107_v28, %v630_v34  ;;  %v1159_v32 = vadd.f32 %v1158_v29, %v638_v36 }
 0x293   : > { %v1296_v60 = vadd.f32 %v1272_v30, %v1949_v50  ;;  %v1298_v61 = vadd.f32 %v1274_v31, %v1250_v52  ;;  %v1110_v51 = vadd.f32 %v1109_v53, %v634_v44  ;;  %v1161_v0 = vadd.f32 %v1160_v57, %v642_v54 }
 0x294   : > { %1319 = vst [vmem:[%s1966_s29 + $0x80] sm:$0xff] %v1295_v37  ;;  %1321 = vst [vmem:[%s1966_s29 + $0x90] sm:$0xff] %v1297_v42  ;;  %v1111_v62 = vpop.f32.mrf.mxu0  ;;  %v1162_v63 = vpop.f32.mrf.mxu1 }
 0x295   : > { %1320 = vst [vmem:[%s1966_s29 + $0x88] sm:$0xff] %v1296_v60  ;;  %1322 = vst [vmem:[%s1966_s29 + $0x98] sm:$0xff] %v1298_v61  ;;  %v1112_v33 = vadd.f32 %v1111_v62, %v630_v34  ;;  %v1163_v49 = vadd.f32 %v1162_v63, %v638_v36 }
 0x296   : > { %v1113_v55 = vpop.f32.mrf.mxu0  ;;  %v1164_v3 = vpop.f32.mrf.mxu1 }
 0x297   : > { %v1179_v4 = vpack.c.bf16 %v1112_v33, %v1108_v43  ;;  %v1181_v46 = vpack.c.bf16 %v1163_v49, %v1159_v32  ;;  %v1114_v56 = vadd.f32 %v1113_v55, %v634_v44  ;;  %v1165_v5 = vadd.f32 %v1164_v3, %v642_v54 }
 0x298   : > { %v1117_v50 = vpop.f32.mrf.mxu0  ;;  %v1168_v52 = vpop.f32.mrf.mxu1 }
 0x299   : > { %1559 = vtanh.bf16 %v1179_v4  ;;  %v1180_v6 = vpack.c.bf16 %v1114_v56, %v1110_v51  ;;  %v1182_v7 = vpack.c.bf16 %v1165_v5, %v1161_v0  ;;  %v1118_v8 = vadd.f32 %v1117_v50, %v630_v34 }
 0x29a   : > { %1561 = vtanh.bf16 %v1181_v46  ;;  %v1169_v9 = vadd.f32 %v1168_v52, %v638_v36  ;;  %v1119_v10 = vpop.f32.mrf.mxu0  ;;  %v1170_v11 = vpop.f32.mrf.mxu1 }
 0x29b   : > { %1563 = vtanh.bf16 %v1180_v6  ;;  %v1187_v12 = vpack.c.bf16 %v1118_v8, %v1118_v8  ;;  %v1120_v13 = vadd.f32 %v1119_v10, %v634_v44  ;;  %v1171_v14 = vadd.f32 %v1170_v11, %v642_v54 }
 0x29c   : > { %1565 = vtanh.bf16 %v1182_v7  ;;  %v1189_v15 = vpack.c.bf16 %v1169_v9, %v1169_v9  ;;  %v1121_v16 = vpop.f32.mrf.mxu0  ;;  %v1172_v17 = vpop.f32.mrf.mxu1 }
 0x29d   : > { %1567 = vtanh.bf16 %v1187_v12  ;;  %v1188_v18 = vpack.c.bf16 %v1120_v13, %v1120_v13  ;;  %v1190_v19 = vpack.c.bf16 %v1171_v14, %v1171_v14 }
 0x29e   : > { %1569 = vtanh.bf16 %v1189_v15  ;;  %v1122_v20 = vpop.f32.mrf.mxu0  ;;  %v1173_v21 = vpop.f32.mrf.mxu1 }
 0x29f   : > { %1571 = vtanh.bf16 %v1188_v18 }
 0x2a0   : > { %1573 = vtanh.bf16 %v1190_v19 }
 0x2a7   : > { %v1560_v22 = vpop.eup %1559 }
 0x2a8   : > { %v1562_v23 = vpop.eup %1561  ;;  %v1211_v24 = vunpack.c.l.bf16 %v1560_v22  ;;  %v1219_v25 = vunpack.c.h.bf16 %v1560_v22 }
 0x2a9   : > { %v1564_v26 = vpop.eup %1563  ;;  %v1213_v27 = vunpack.c.l.bf16 %v1562_v23  ;;  %v1221_v28 = vunpack.c.h.bf16 %v1562_v23 }
 0x2aa   : > { %v1566_v29 = vpop.eup %1565  ;;  %v1259_v30 = vmul.f32 0.01, %v1211_v24  ;;  %v1267_v31 = vmul.f32 0.01, %v1219_v25  ;;  %v1212_v34 = vunpack.c.l.bf16 %v1564_v26  ;;  %v1220_v36 = vunpack.c.h.bf16 %v1564_v26 }
 0x2ab   : > { %v1568_v37 = vpop.eup %1567  ;;  %v1261_v42 = vmul.f32 0.01, %v1213_v27  ;;  %v1269_v44 = vmul.f32 0.01, %v1221_v28  ;;  %v1214_v53 = vunpack.c.l.bf16 %v1566_v29  ;;  %v1222_v54 = vunpack.c.h.bf16 %v1566_v29 }
 0x2ac   : > { %v1570_v57 = vpop.eup %1569  ;;  %v1283_v60 = vadd.f32 %v1259_v30, %v1922_v38  ;;  %v1291_v61 = vadd.f32 %v1267_v31, %v1936_v45  ;;  %v1260_v62 = vmul.f32 0.01, %v1212_v34  ;;  %v1268_v63 = vmul.f32 0.01, %v1220_v36 }
 0x2ad   : > { %v1572_v43 = vpop.eup %1571  ;;  %v1285_v32 = vadd.f32 %v1261_v42, %v1928_v40  ;;  %v1293_v33 = vadd.f32 %v1269_v44, %v1942_v35  ;;  %v1262_v49 = vmul.f32 0.01, %v1214_v53  ;;  %v1270_v51 = vmul.f32 0.01, %v1222_v54 }
 0x2ae   : > { %v1574_v0 = vpop.eup %1573  ;;  %1307 = vst [vmem:[%s1966_s29 + $0x20] sm:$0xff] %v1283_v60  ;;  %1315 = vst [vmem:[%s1966_s29 + $0x60] sm:$0xff] %v1291_v61  ;;  %v1284_v38 = vadd.f32 %v1260_v62, %v1925_v39  ;;  %v1292_v45 = vadd.f32 %v1268_v63, %v1939_v47  ;;  %v1227_v55 = vunpack.c.l.bf16 %v1568_v37  ;;  %v1229_v3 = vunpack.c.l.bf16 %v1570_v57 }
 0x2af   : > { %1309 = vst [vmem:[%s1966_s29 + $0x30] sm:$0xff] %v1285_v32  ;;  %1317 = vst [vmem:[%s1966_s29 + $0x70] sm:$0xff] %v1293_v33  ;;  %v1286_v40 = vadd.f32 %v1262_v49, %v1931_v41  ;;  %v1294_v35 = vadd.f32 %v1270_v51, %v1945_v48  ;;  %v1228_v4 = vunpack.c.l.bf16 %v1572_v43  ;;  %v1230_v46 = vunpack.c.l.bf16 %v1574_v0 }
 0x2b0   : > { %1308 = vst [vmem:[%s1966_s29 + $0x28] sm:$0xff] %v1284_v38  ;;  %1316 = vst [vmem:[%s1966_s29 + $0x68] sm:$0xff] %v1292_v45  ;;  %v1275_v56 = vmul.f32 0.01, %v1227_v55  ;;  %v1277_v39 = vmul.f32 0.01, %v1229_v3 }
 0x2b1   : > { %1310 = vst [vmem:[%s1966_s29 + $0x38] sm:$0xff] %v1286_v40  ;;  %1318 = vst [vmem:[%s1966_s29 + $0x78] sm:$0xff] %v1294_v35  ;;  %v1276_v47 = vmul.f32 0.01, %v1228_v4  ;;  %v1278_v5 = vmul.f32 0.01, %v1230_v46 }
 0x2b2   : > { %v1299_v50 = vadd.f32 %v1275_v56, %v1956_v58  ;;  %v1301_v41 = vadd.f32 %v1277_v39, %v1969_v1 }
 0x2b3   : > { %v1300_v52 = vadd.f32 %v1276_v47, %v1959_v59  ;;  %v1302_v48 = vadd.f32 %v1278_v5, %v1972_v2 }
 0x2b4   : > { %1323 = vst [vmem:[%s1966_s29 + $0xa0] sm:$0xff] %v1299_v50  ;;  %1325 = vst [vmem:[%s1966_s29 + $0xb0] sm:$0xff] %v1301_v41 }
 0x2b5   : > { %1324 = vst [vmem:[%s1966_s29 + $0xa8] sm:$0xff] %v1300_v52  ;;  %1326 = vst [vmem:[%s1966_s29 + $0xb8] sm:$0xff] %v1302_v48 }
 0x2b6 PF: > { %s18_s27 = sadd.s32 1, %s1581_s27  }
 0x2b7   : > { %p15_p4 = scmp.ge.s32.totalorder %s18_s27, 4  }
 0x2b9   :  { %17 = sbr.rel (!%p15_p4) target bundleno = 1 (0x1), region = 85 }

</bundles_post_ra>
